<compile_context>
chip_gen: v5e
topology: v5e:2x2
jax: 0.10.0
libtpu: 0.0.40
codegen_flags: <defaults>
</compile_context>

<pallas_src>
import jax
import jax.numpy as jnp
from jax import lax
from jax.experimental import pallas as pl
from jax.experimental.pallas import tpu as pltpu


# ----------------------------------------------------------------------------
# Kernel
# ----------------------------------------------------------------------------
def _make_mlp_kernel(n_linear, mxu_dtype):
    """Kernel applying the full MLP to one (block_rows, n_inputs) batch tile.

    Parameter refs are interleaved (w0, b0, w1, b1, ..., wLt, bL):
      w0        : (n_units, n_inputs)   PyTorch-native (out, in)
      b0..b_{L-1}: (n_units, 1)         column bias (lane-broadcast)
      wi (mid)  : (n_units, n_units)
      wLt       : (n_units, n_inputs)   LAST weight pre-transposed to (in, out)
      bL        : (1, n_inputs)         row bias (sublane-broadcast)
    """

    def kernel(*refs):
        y_ref = refs[0]
        out_ref = refs[-1]
        params = refs[1:-1]

        x = y_ref[...]  # (block_rows, n_inputs), natural layout.

        # Layer 0: h = W0 @ x^T  ->  (n_units, block_rows).  The contraction
        # over the feature axis puts the batch on the 128-wide lane axis; the
        # MXU handles the orientation, no explicit transpose is materialized.
        w0, b0 = params[0], params[1]
        h = lax.dot_general(
            w0[...].astype(mxu_dtype), x.astype(mxu_dtype),
            dimension_numbers=(((1,), (1,)), ((), ())),
            preferred_element_type=jnp.float32)
        h = h + b0[...].astype(jnp.float32)

        # Hidden layers: Tanh then Linear(n_units, n_units), lane-dense
        # (batch on lanes -> dense EUP tanh, unmasked VPU bias adds).
        for li in range(1, n_linear - 1):
            w, b = params[2 * li], params[2 * li + 1]
            h = jnp.tanh(h)  # f32 on EUP (v5e has no bf16 elementwise).
            h = jnp.dot(w[...].astype(mxu_dtype), h.astype(mxu_dtype),
                        preferred_element_type=jnp.float32)
            h = h + b[...].astype(jnp.float32)

        # Final layer: Tanh then Linear(n_units, n_inputs).  Contract over the
        # feature axis of both operands so the result comes out directly in
        # natural (block_rows, n_inputs) layout for an in-place store.
        w_t, b_row = params[-2], params[-1]
        h = jnp.tanh(h)
        out = lax.dot_general(
            h.astype(mxu_dtype), w_t[...].astype(mxu_dtype),
            dimension_numbers=(((0,), (0,)), ((), ())),
            preferred_element_type=jnp.float32)
        out = out + b_row[...].astype(jnp.float32)
        out_ref[...] = out.astype(out_ref.dtype)

    return kernel


# ----------------------------------------------------------------------------
# Sizing helpers
# ----------------------------------------------------------------------------
def _physical_vmem_cap_bytes():
    """~85% of physical VMEM, generation-aware (v7x: 64 MiB, v5e/v6e: 128 MiB)."""
    try:
        phys = int(pltpu.get_tpu_info().vmem_capacity_bytes)
    except Exception:
        phys = 64 << 20  # conservative fallback = v7x
    return min(int(phys * 0.85), 100 << 20)


def _choose_block_rows(batch, n_inputs, n_units, itemsize):
    """Batch tile so each I/O tile is ~1 MiB (amortizes ~0.35us/grid-step
    overhead) while keeping the f32 (n_units, block_rows) intermediates
    bounded; multiple of 128 so the batch axis is lane-dense in the kernel."""
    target_io = 1 << 20
    br = target_io // max(1, n_inputs * itemsize)
    br = min(br, (8 << 20) // max(1, 4 * n_units))
    br = max(br, 1024)
    if batch <= br:
        return batch
    return max(128, (br // 128) * 128)


def _vmem_limit_bytes(n_inputs, n_units, block_rows, kparams, y_dtype,
                      single_buffer_params):
    itemsize = jnp.dtype(y_dtype).itemsize
    io_tile = block_rows * n_inputs * itemsize
    param_copies = 1 if single_buffer_params else 2
    param_bytes = sum(int(p.size) * p.dtype.itemsize for p in kparams)
    # A handful of live f32 (n_units, block_rows) activations plus the f32
    # natural-layout input/output values.
    inter = 6 * n_units * block_rows * 4 + 2 * block_rows * n_inputs * 4
    est = 2 * (2 * io_tile) + param_copies * param_bytes + inter
    est = int(est * 1.5) + (8 << 20)  # headroom
    return max(16 << 20, min(est, _physical_vmem_cap_bytes()))


_PARAM_SINGLE_BUFFER_BYTES = 512 * 1024


def _param_spec(shape, single_buffer):
    """Grid-invariant parameter block; single-buffer it when it is big enough
    for the saved VMEM to matter."""
    if single_buffer:
        try:
            return pl.BlockSpec(shape, lambda i: (0, 0),
                                pipeline_mode=pl.Buffered(1))
        except TypeError:  # BlockSpec without pipeline_mode support
            pass
    return pl.BlockSpec(shape, lambda i: (0, 0))


# ----------------------------------------------------------------------------
# Parameters (PyTorch-native layout)
# ----------------------------------------------------------------------------
def init_odefunc_params(key, n_inputs, n_layers, n_units, dtype=jnp.float32):
    """Flat list [w0, b0, w1, b1, ...]: w in (out, in) layout, b as (out,)."""
    dims = [(n_units, n_inputs)]
    dims += [(n_units, n_units)] * n_layers
    dims += [(n_inputs, n_units)]

    params = []
    for (dout, din) in dims:
        key, kw, kb = jax.random.split(key, 3)
        bound = 1.0 / (float(din) ** 0.5)
        w = jax.random.uniform(kw, (dout, din), dtype, -bound, bound)
        b = jax.random.uniform(kb, (dout,), dtype, -bound, bound)
        params += [w, b]
    return params


# ----------------------------------------------------------------------------
# Forward
# ----------------------------------------------------------------------------
def ode_func_forward(t_local, y, params, backwards=False, *,
                     block_rows=None, mxu_dtype=jnp.bfloat16,
                     core_parallel=False):
    """ODEFunc.forward: grad = MLP(y); negated if backwards.  t_local unused."""
    del t_local  # Not used by get_ode_gradient_nn.
    batch, n_inputs = y.shape
    n_linear = len(params) // 2
    n_units = int(params[0].shape[0])

    # Kernel-layout parameters.  Weights cast once to the MXU dtype (bf16 by
    # default: MXU-native on all generations, halves weight HBM/VMEM traffic);
    # biases stay f32.  The last layer is pre-transposed to (n_units, n_inputs)
    # and, for backwards, pre-negated: -(Wx + b) == (-W)x + (-b) exactly.
    kparams = []
    for li in range(n_linear):
        w = jnp.asarray(params[2 * li])
        b = jnp.asarray(params[2 * li + 1])
        if li == n_linear - 1:
            if backwards:
                w, b = -w, -b
            kparams.append(w.T.astype(mxu_dtype))                   # (n_units, n_inputs)
            kparams.append(b.reshape(1, -1).astype(jnp.float32))    # (1, n_inputs)
        else:
            kparams.append(w.astype(mxu_dtype))                     # (out, in)
            kparams.append(b.reshape(-1, 1).astype(jnp.float32))    # (out, 1)

    # Batch-row tiling (big tiles; grid pipelining amortizes step overhead).
    if block_rows is None:
        block_rows = _choose_block_rows(batch, n_inputs, n_units,
                                        jnp.dtype(y.dtype).itemsize)
    block_rows = int(block_rows)
    if block_rows >= batch:
        block_rows = batch
    else:
        block_rows = max(8, (block_rows // 8) * 8)  # (8,128) sublane rule
    grid = (pl.cdiv(batch, block_rows),)
    # Note: if batch % block_rows != 0, the last block computes on padded rows;
    # all matmuls keep the batch axis free (no cross-row contraction), so the
    # padded rows never contaminate valid rows and their stores are discarded.

    param_bytes = sum(int(p.size) * p.dtype.itemsize for p in kparams)
    single_buffer = param_bytes > _PARAM_SINGLE_BUFFER_BYTES

    in_specs = [pl.BlockSpec((block_rows, n_inputs), lambda i: (i, 0))]
    for p in kparams:
        in_specs.append(_param_spec(p.shape, single_buffer))
    out_spec = pl.BlockSpec((block_rows, n_inputs), lambda i: (i, 0))

    # v7x: shard the (embarrassingly parallel) batch axis across both
    # TensorCores when requested; plain "parallel" is the safe default for
    # single-TC v5e/v6e.
    if core_parallel and grid[0] >= 2:
        dim_sem = (pltpu.CORE_PARALLEL,)
    else:
        dim_sem = ("parallel",)

    kernel = _make_mlp_kernel(n_linear, mxu_dtype)

    grad = pl.pallas_call(
        kernel,
        out_shape=jax.ShapeDtypeStruct((batch, n_inputs), y.dtype),
        grid_spec=pltpu.PrefetchScalarGridSpec(
            num_scalar_prefetch=0,
            grid=grid,
            in_specs=in_specs,
            out_specs=out_spec,
        ),
        compiler_params=pltpu.CompilerParams(
            dimension_semantics=dim_sem,
            vmem_limit_bytes=_vmem_limit_bytes(
                n_inputs, n_units, block_rows, kparams, y.dtype, single_buffer),
        ),
    )(y, *kparams)

    return grad


# ----------------------------------------------------------------------------
# Pure-JAX reference
# ----------------------------------------------------------------------------
def ode_func_forward_ref(t_local, y, params, backwards=False):
    """Pure-JAX f32 reference with PyTorch-native param layout."""
    del t_local
    n_linear = len(params) // 2
    x = y.astype(jnp.float32)
    x = x @ params[0].astype(jnp.float32).T + params[1].astype(jnp.float32)
    for li in range(1, n_linear):
        x = jnp.tanh(x)
        x = x @ params[2 * li].astype(jnp.float32).T + params[2 * li + 1].astype(jnp.float32)
    x = x.astype(y.dtype)
    return -x if backwards else x


# ----------------------------------------------------------------------------
# Demo / self-check
# ----------------------------------------------------------------------------
if __name__ == "__main__":
    # Small shapes consistent with the module: ODEFunc(n_inputs=16, n_layers=2, n_units=32)
    n_inputs, n_layers, n_units = 16, 2, 32

    key = jax.random.PRNGKey(0)
    kp, ky1, ky2 = jax.random.split(key, 3)
    params = init_odefunc_params(kp, n_inputs, n_layers, n_units)
    t_local = jnp.zeros((), jnp.float32)  # unused by the forward pass

    # --- single-tile numerics check (batch=8), fwd & bwd, f32 and bf16 MXU ---
    y = jax.random.normal(ky1, (8, n_inputs), jnp.float32)

    grad_f32 = jax.block_until_ready(
        ode_func_forward(t_local, y, params, backwards=False, mxu_dtype=jnp.float32))
    grad_f32_bwd = jax.block_until_ready(
        ode_func_forward(t_local, y, params, backwards=True, mxu_dtype=jnp.float32))
    grad_bf16 = jax.block_until_ready(
        ode_func_forward(t_local, y, params, backwards=False))
    grad_bf16_bwd = jax.block_until_ready(
        ode_func_forward(t_local, y, params, backwards=True))

    ref = ode_func_forward_ref(t_local, y, params, backwards=False)
    ref_bwd = ode_func_forward_ref(t_local, y, params, backwards=True)

    assert grad_f32.shape == (8, n_inputs) and grad_f32.dtype == jnp.float32
    assert jnp.allclose(grad_f32, ref, atol=1e-4, rtol=1e-4)
    assert jnp.allclose(grad_f32_bwd, ref_bwd, atol=1e-4, rtol=1e-4)
    assert jnp.allclose(grad_bf16, ref, atol=5e-2, rtol=5e-2)
    assert jnp.allclose(grad_bf16_bwd, ref_bwd, atol=5e-2, rtol=5e-2)

    # --- multi-tile path: grid=3 with a ragged last block (pipelining +
    #     padded-row discard semantics), still small enough for a quick demo ---
    y_tiled = jax.random.normal(ky2, (640, n_inputs), jnp.float32)
    grad_tiled = jax.block_until_ready(
        ode_func_forward(t_local, y_tiled, params, backwards=False,
                         block_rows=256, mxu_dtype=jnp.float32))
    ref_tiled = ode_func_forward_ref(t_local, y_tiled, params, backwards=False)
    assert grad_tiled.shape == (640, n_inputs)
    assert jnp.allclose(grad_tiled, ref_tiled, atol=1e-4, rtol=1e-4)

    # TODO(synk): on v7x pass core_parallel=True (2 TensorCores); benchmark with
    # lane-multiple batches >= a few thousand to exercise the performance path.
    print("KERNEL_OK")
</pallas_src>

<mosaic_0001>
module attributes {stable_mosaic.version = 11 : i64} {
  func.func @kernel(%arg0: i32, %arg1: memref<8x16xf32, #tpu.memory_space<vmem>>, %arg2: memref<32x16xf32, #tpu.memory_space<vmem>>, %arg3: memref<32x1xf32, #tpu.memory_space<vmem>>, %arg4: memref<32x32xf32, #tpu.memory_space<vmem>>, %arg5: memref<32x1xf32, #tpu.memory_space<vmem>>, %arg6: memref<32x32xf32, #tpu.memory_space<vmem>>, %arg7: memref<32x1xf32, #tpu.memory_space<vmem>>, %arg8: memref<32x16xf32, #tpu.memory_space<vmem>>, %arg9: memref<1x16xf32, #tpu.memory_space<vmem>>, %arg10: memref<8x16xf32, #tpu.memory_space<vmem>>) attributes {dimension_semantics = [#tpu.dimension_semantics<parallel>], iteration_bounds = array<i64: 1>, scalar_prefetch = 0 : i64, scratch_operands = 0 : i64, tpu.core_type = #tpu.core_type<tc>, window_params = [{transform_indices = @transform_0, window_bounds = array<i64: 8, 16>}, {pipeline_mode = #tpu.pipeline_mode<synchronous>, transform_indices = @transform_1, window_bounds = array<i64: 32, 16>}, {pipeline_mode = #tpu.pipeline_mode<synchronous>, transform_indices = @transform_2, window_bounds = array<i64: 32, 1>}, {pipeline_mode = #tpu.pipeline_mode<synchronous>, transform_indices = @transform_3, window_bounds = array<i64: 32, 32>}, {pipeline_mode = #tpu.pipeline_mode<synchronous>, transform_indices = @transform_4, window_bounds = array<i64: 32, 1>}, {pipeline_mode = #tpu.pipeline_mode<synchronous>, transform_indices = @transform_5, window_bounds = array<i64: 32, 32>}, {pipeline_mode = #tpu.pipeline_mode<synchronous>, transform_indices = @transform_6, window_bounds = array<i64: 32, 1>}, {pipeline_mode = #tpu.pipeline_mode<synchronous>, transform_indices = @transform_7, window_bounds = array<i64: 32, 16>}, {pipeline_mode = #tpu.pipeline_mode<synchronous>, transform_indices = @transform_8, window_bounds = array<i64: 1, 16>}, {transform_indices = @transform_9, window_bounds = array<i64: 8, 16>}]} {
    %c0 = arith.constant 0 : index
    %c0_0 = arith.constant 0 : index
    %0 = vector.load %arg1[%c0, %c0_0] : memref<8x16xf32, #tpu.memory_space<vmem>>, vector<8x16xf32>
    %c0_1 = arith.constant 0 : index
    %c0_2 = arith.constant 0 : index
    %1 = vector.load %arg2[%c0_1, %c0_2] : memref<32x16xf32, #tpu.memory_space<vmem>>, vector<32x16xf32>
    %cst = arith.constant dense<0.000000e+00> : vector<32x8xf32>
    %2 = tpu.matmul %1, %0, %cst {dimension_numbers = #tpu.dot_dimension_numbers<[1], [1], [0], [0], [0, 0, 1, 0], [], []>} : vector<32x16xf32>, vector<8x16xf32>, vector<32x8xf32> -> vector<32x8xf32>
    %c0_3 = arith.constant 0 : index
    %c0_4 = arith.constant 0 : index
    %3 = vector.load %arg3[%c0_3, %c0_4] : memref<32x1xf32, #tpu.memory_space<vmem>>, vector<32x1xf32>
    %4 = vector.broadcast %3 : vector<32x1xf32> to vector<32x8xf32>
    %5 = arith.addf %2, %4 : vector<32x8xf32>
    %6 = math.tanh %5 : vector<32x8xf32>
    %c0_5 = arith.constant 0 : index
    %c0_6 = arith.constant 0 : index
    %7 = vector.load %arg4[%c0_5, %c0_6] : memref<32x32xf32, #tpu.memory_space<vmem>>, vector<32x32xf32>
    %cst_7 = arith.constant dense<0.000000e+00> : vector<32x8xf32>
    %8 = tpu.matmul %7, %6, %cst_7 {dimension_numbers = #tpu.dot_dimension_numbers<[1], [0], [0], [1], [0, 0, 1, 1], [], []>} : vector<32x32xf32>, vector<32x8xf32>, vector<32x8xf32> -> vector<32x8xf32>
    %c0_8 = arith.constant 0 : index
    %c0_9 = arith.constant 0 : index
    %9 = vector.load %arg5[%c0_8, %c0_9] : memref<32x1xf32, #tpu.memory_space<vmem>>, vector<32x1xf32>
    %10 = vector.broadcast %9 : vector<32x1xf32> to vector<32x8xf32>
    %11 = arith.addf %8, %10 : vector<32x8xf32>
    %12 = math.tanh %11 : vector<32x8xf32>
    %c0_10 = arith.constant 0 : index
    %c0_11 = arith.constant 0 : index
    %13 = vector.load %arg6[%c0_10, %c0_11] : memref<32x32xf32, #tpu.memory_space<vmem>>, vector<32x32xf32>
    %cst_12 = arith.constant dense<0.000000e+00> : vector<32x8xf32>
    %14 = tpu.matmul %13, %12, %cst_12 {dimension_numbers = #tpu.dot_dimension_numbers<[1], [0], [0], [1], [0, 0, 1, 1], [], []>} : vector<32x32xf32>, vector<32x8xf32>, vector<32x8xf32> -> vector<32x8xf32>
    %c0_13 = arith.constant 0 : index
    %c0_14 = arith.constant 0 : index
    %15 = vector.load %arg7[%c0_13, %c0_14] : memref<32x1xf32, #tpu.memory_space<vmem>>, vector<32x1xf32>
    %16 = vector.broadcast %15 : vector<32x1xf32> to vector<32x8xf32>
    %17 = arith.addf %14, %16 : vector<32x8xf32>
    %18 = math.tanh %17 : vector<32x8xf32>
    %c0_15 = arith.constant 0 : index
    %c0_16 = arith.constant 0 : index
    %19 = vector.load %arg8[%c0_15, %c0_16] : memref<32x16xf32, #tpu.memory_space<vmem>>, vector<32x16xf32>
    %cst_17 = arith.constant dense<0.000000e+00> : vector<8x16xf32>
    %20 = tpu.matmul %18, %19, %cst_17 {dimension_numbers = #tpu.dot_dimension_numbers<[0], [0], [1], [1], [0, 1, 1, 1], [], []>} : vector<32x8xf32>, vector<32x16xf32>, vector<8x16xf32> -> vector<8x16xf32>
    %c0_18 = arith.constant 0 : index
    %c0_19 = arith.constant 0 : index
    %21 = vector.load %arg9[%c0_18, %c0_19] : memref<1x16xf32, #tpu.memory_space<vmem>>, vector<1x16xf32>
    %22 = vector.broadcast %21 : vector<1x16xf32> to vector<8x16xf32>
    %23 = arith.addf %20, %22 : vector<8x16xf32>
    %c0_20 = arith.constant 0 : index
    %c0_21 = arith.constant 0 : index
    %24 = vector.load %arg10[%c0_20, %c0_21] : memref<8x16xf32, #tpu.memory_space<vmem>>, vector<8x16xf32>
    tpu.vector_store %arg10[%c0_20, %c0_21], %23 {strides = array<i32>} : memref<8x16xf32, #tpu.memory_space<vmem>>, vector<8x16xf32>,
    return
  }
  func.func @transform_0(%arg0: i32) -> (i32, i32) {
    %c0_i32 = arith.constant 0 : i32
    %c0_i32_0 = arith.constant 0 : i32
    return %arg0, %c0_i32 : i32, i32
  }
  func.func @transform_1(%arg0: i32) -> (i32, i32) {
    %c0_i32 = arith.constant 0 : i32
    %c0_i32_0 = arith.constant 0 : i32
    %c0_i32_1 = arith.constant 0 : i32
    return %c0_i32, %c0_i32_0 : i32, i32
  }
  func.func @transform_2(%arg0: i32) -> (i32, i32) {
    %c0_i32 = arith.constant 0 : i32
    %c0_i32_0 = arith.constant 0 : i32
    %c0_i32_1 = arith.constant 0 : i32
    return %c0_i32, %c0_i32_0 : i32, i32
  }
  func.func @transform_3(%arg0: i32) -> (i32, i32) {
    %c0_i32 = arith.constant 0 : i32
    %c0_i32_0 = arith.constant 0 : i32
    %c0_i32_1 = arith.constant 0 : i32
    return %c0_i32, %c0_i32_0 : i32, i32
  }
  func.func @transform_4(%arg0: i32) -> (i32, i32) {
    %c0_i32 = arith.constant 0 : i32
    %c0_i32_0 = arith.constant 0 : i32
    %c0_i32_1 = arith.constant 0 : i32
    return %c0_i32, %c0_i32_0 : i32, i32
  }
  func.func @transform_5(%arg0: i32) -> (i32, i32) {
    %c0_i32 = arith.constant 0 : i32
    %c0_i32_0 = arith.constant 0 : i32
    %c0_i32_1 = arith.constant 0 : i32
    return %c0_i32, %c0_i32_0 : i32, i32
  }
  func.func @transform_6(%arg0: i32) -> (i32, i32) {
    %c0_i32 = arith.constant 0 : i32
    %c0_i32_0 = arith.constant 0 : i32
    %c0_i32_1 = arith.constant 0 : i32
    return %c0_i32, %c0_i32_0 : i32, i32
  }
  func.func @transform_7(%arg0: i32) -> (i32, i32) {
    %c0_i32 = arith.constant 0 : i32
    %c0_i32_0 = arith.constant 0 : i32
    %c0_i32_1 = arith.constant 0 : i32
    return %c0_i32, %c0_i32_0 : i32, i32
  }
  func.func @transform_8(%arg0: i32) -> (i32, i32) {
    %c0_i32 = arith.constant 0 : i32
    %c0_i32_0 = arith.constant 0 : i32
    %c0_i32_1 = arith.constant 0 : i32
    return %c0_i32, %c0_i32_0 : i32, i32
  }
  func.func @transform_9(%arg0: i32) -> (i32, i32) {
    %c0_i32 = arith.constant 0 : i32
    %c0_i32_0 = arith.constant 0 : i32
    return %arg0, %c0_i32 : i32, i32
  }
}

</mosaic_0001>

<bundles_post_ra>
// kernel: tpu_custom_call.1
= control target key start
LH: loop header
LB: loop body
LE: loop exit
PB: predicated region body
PF: predicated region fallthrough
CT: control target
= control target key end

     0   :  { %vm62_vm0 = vcmask 130048   ;;  %v409_v3 = vmov 0   ;;  %s569_s0 = inlined_call_operand.vmem [shape: f32[8,16], index: 0, kind: input, shape index: {}]   ;;  %s570_s1 = inlined_call_operand.vmem [shape: f32[32,16], index: 1, kind: input, shape index: {}]   ;;  %s571_s2 = inlined_call_operand.vmem [shape: f32[32,1], index: 2, kind: input, shape index: {}]   ;;  %s572_s3 = inlined_call_operand.vmem [shape: f32[32,32], index: 3, kind: input, shape index: {}]   ;;  %s573_s4 = inlined_call_operand.vmem [shape: f32[32,1], index: 4, kind: input, shape index: {}]   ;;  %s574_s5 = inlined_call_operand.vmem [shape: f32[32,32], index: 5, kind: input, shape index: {}]   ;;  %s575_s6 = inlined_call_operand.vmem [shape: f32[32,1], index: 6, kind: input, shape index: {}]   ;;  %s576_s7 = inlined_call_operand.vmem [shape: f32[32,16], index: 7, kind: input, shape index: {}]   ;;  %s577_s8 = inlined_call_operand.vmem [shape: f32[1,16], index: 8, kind: input, shape index: {}]   ;;  %s578_s9 = inlined_call_operand.hbm [shape: f32[8,16], index: 9, kind: output, shape index: {}]  }
   0x1   :  { %v33_v0 = vld [vmem:[%s569_s0] sm:$0xff]  ;;  %v39_v1 = vld [vmem:[%s571_s2 + $0x8] sm:$0xff]  ;;  %356 = vset.pattern.permute.xlu1 %v409_v3  ;;  %v41_v4 = vld [vmem:[%s571_s2 + $0x18] sm:$0xff]  ;;  %355 = vset.pattern.permute.xlu0 %v409_v3 }
   0x2   :  { %338 = vmatpush.xpose.msk.msra.mxu0 %vm62_vm0, %v33_v0  ;;  %v34_v2 = vld [vmem:[%s570_s1] sm:$0xff]  ;;  %49 = vperm.xlu1 %356, %v39_v1  }
   0x3   :  { %59 = vperm.xlu0 %355, %v41_v4   ;;  %357 = vset.pattern.permute.xlu2 %v409_v3 }
   0x5   :  { %339 = vmatmul.msk.f32.vlgmr.msra.gmra.mxu0 %vm62_vm0, %v34_v2 }
   0x6   :  { %14 = vsyncpa [#allocation3], 0  ;;  %v38_v5 = vld [vmem:[%s571_s2] sm:$0xff]  ;;  %v40_v6 = vld [vmem:[%s571_s2 + $0x10] sm:$0xff]  ;;  %vm139_vm1 = vcmask 261120   ;;  %s410_s16 = smov [#allocation2]  }
   0x7   :  { %v35_v7 = vld [vmem:[%s570_s1 + $0x8] sm:$0xff]  ;;  %v115_v8 = vld [vmem:[%s573_s4] sm:$0xff]  ;;  %v36_v10 = vld [vmem:[%s570_s1 + $0x10] sm:$0xff]  ;;  %s327_s0 = sshll.u32 %s410_s16, 4  ;;  %s329_s19 = sshll.u32 %s578_s9, 4  ;;  %s328_s0 = int_to_ptr.vmem [resolvable:$true] %s327_s0  ;;  %s330_s19 = int_to_ptr.hbm [resolvable:$true] %s329_s19 }
   0x8   :  { %v116_v9 = vld [vmem:[%s573_s4 + $0x8] sm:$0xff]  ;;  %v191_v11 = vld [vmem:[%s575_s6 + $0x10] sm:$0xff]  ;;  %v37_v13 = vld [vmem:[%s570_s1 + $0x18] sm:$0xff] }
   0x9   :  { %v190_v12 = vld [vmem:[%s575_s6 + $0x8] sm:$0xff]  ;;  %v118_v27 = vld [vmem:[%s573_s4 + $0x18] sm:$0xff]  ;;  %v111_v30 = vld [vmem:[%s572_s3] sm:$0xff] }
   0xa   :  { %44 = vperm.xlu1 %356, %v38_v5   ;;  %136 = vperm.xlu2 %357, %v118_v27   ;;  %v117_v32 = vld [vmem:[%s573_s4 + $0x10] sm:$0xff]  ;;  %v112_v33 = vld [vmem:[%s572_s3 + $0x8] sm:$0xff]  ;;  %v189_v34 = vld [vmem:[%s575_s6] sm:$0xff] }
   0xb   :  { %54 = vperm.xlu0 %355, %v40_v6   ;;  %v113_v35 = vld [vmem:[%s572_s3 + $0x10] sm:$0xff]  ;;  %v192_v36 = vld [vmem:[%s575_s6 + $0x18] sm:$0xff]  ;;  %v185_v53 = vld [vmem:[%s574_s5] sm:$0xff] }
   0xc   :  { %v114_v37 = vld [vmem:[%s572_s3 + $0x18] sm:$0xff]  ;;  %v186_v55 = vld [vmem:[%s574_s5 + $0x8] sm:$0xff]  ;;  %v187_v56 = vld [vmem:[%s574_s5 + $0x10] sm:$0xff] }
   0xd   :  { %340 = vmatmul.msk.f32.gmra.mxu0 %vm62_vm0, %v35_v7  ;;  %v188_v57 = vld [vmem:[%s574_s5 + $0x18] sm:$0xff]  ;;  %v260_v62 = vld [vmem:[%s576_s7 + $0x10] sm:$0xff]  ;;  %v259_v63 = vld [vmem:[%s576_s7 + $0x8] sm:$0xff] }
   0xe   :  { %v261_v61 = vld [vmem:[%s576_s7 + $0x18] sm:$0xff]  ;;  %v258_v0 = vld [vmem:[%s576_s7] sm:$0xff] }
   0xf   :  { %313 = vmatpush.msra.mxu3 %v261_v61 }
  0x11   :  { %314 = vmatpush.msra.mxu3 %v260_v62 }
  0x12   :  { %121 = vperm.xlu1 %356, %v115_v8   ;;  %131 = vperm.xlu2 %357, %v117_v32  }
  0x13   :  { %126 = vperm.xlu0 %355, %v116_v9   ;;  %315 = vmatpush.msra.mxu3 %v259_v63 }
  0x15   :  { %341 = vmatmul.msk.f32.gmra.mxu0 %vm62_vm0, %v36_v10  ;;  %316 = vmatpush.msra.mxu3 %v258_v0 }
  0x1a   :  { %205 = vperm.xlu1 %356, %v191_v11   ;;  %195 = vperm.xlu2 %357, %v189_v34  }
  0x1b   :  { %200 = vperm.xlu0 %355, %v190_v12  }
  0x1d   :  { %342 = vmatmul.msk.f32.gmra.mxu0 %vm62_vm0, %v37_v13 }
  0x22   :  { %210 = vperm.xlu2 %357, %v192_v36  }
  0x64   :  { %v137_v40 = vpop.permute.xlu2 %136 }
  0x6c   :  { %v132_v42 = vpop.permute.xlu2 %131 }
  0x74   :  { %v50_v17 = vpop.permute.xlu1 %49  ;;  %v196_v58 = vpop.permute.xlu2 %195 }
  0x75   :  { %v60_v16 = vpop.permute.xlu0 %59 }
  0x7c   :  { %v45_v23 = vpop.permute.xlu1 %44  ;;  %v211_v9 = vpop.permute.xlu2 %210 }
  0x7d   :  { %v55_v19 = vpop.permute.xlu0 %54 }
  0x82   :  { %v95_v14 = vpop.f32.mrf.mxu0 }
  0x83   :  { %v96_v25 = vadd.f32 %v95_v14, %v45_v23 }
  0x84   :  { %v122_v48 = vpop.permute.xlu1 %121 }
  0x85   :  { %v127_v46 = vpop.permute.xlu0 %126 }
  0x8a   :  { %v98_v15 = vpop.f32.mrf.mxu0 }
  0x8b   :  { %v99_v24 = vadd.f32 %v98_v15, %v50_v17  ;;  %v358_v15 = vld [vmem:[%s577_s8] ss:$0 sm:$0xff] }
  0x8c   :  { %v206_v5 = vpop.permute.xlu1 %205 }
  0x8d   :  { %v201_v1 = vpop.permute.xlu0 %200 }
  0x92   :  { %v101_v18 = vpop.f32.mrf.mxu0 }
  0x93   :  { %v102_v21 = vadd.f32 %v101_v18, %v55_v19 }
  0x9a   :  { %v104_v20 = vpop.f32.mrf.mxu0 }
  0x9b   :  { %v105_v22 = vadd.f32 %v104_v20, %v60_v16 }
  0x9d   :  { %359 = vtanh.f32 %v105_v22 }
  0x9e   :  { %361 = vtanh.f32 %v102_v21 }
  0x9f   :  { %363 = vtanh.f32 %v99_v24 }
  0xa0   :  { %365 = vtanh.f32 %v96_v25 }
  0xa3   :  { %v360_v26 = vpop.eup %359 }
  0xa4   :  { %164 = vmatpush.msra.mxu1 %v360_v26  ;;  %v362_v28 = vpop.eup %361 }
  0xa5   :  { %v364_v29 = vpop.eup %363 }
  0xa6   :  { %165 = vmatpush.msra.mxu1 %v362_v28  ;;  %v366_v31 = vpop.eup %365 }
  0xa8   :  { %166 = vmatpush.msra.mxu1 %v364_v29 }
  0xaa   :  { %167 = vmatpush.msra.mxu1 %v366_v31 }
  0xab   :  { %343 = vmatmul.msk.f32.vlgmr.msra.gmra.mxu1 %vm139_vm1, %v111_v30 }
  0xb3   :  { %344 = vmatmul.msk.f32.gmra.mxu1 %vm139_vm1, %v112_v33 }
  0xbb   :  { %345 = vmatmul.msk.f32.gmra.mxu1 %vm139_vm1, %v113_v35 }
  0xc3   :  { %346 = vmatmul.msk.f32.gmra.mxu1 %vm139_vm1, %v114_v37 }
 0x128   :  { %v169_v38 = vpop.f32.mrf.mxu1 }
 0x129   :  { %v170_v49 = vadd.f32 %v169_v38, %v122_v48 }
 0x130   :  { %v172_v39 = vpop.f32.mrf.mxu1 }
 0x131   :  { %v173_v47 = vadd.f32 %v172_v39, %v127_v46 }
 0x138   :  { %v175_v41 = vpop.f32.mrf.mxu1 }
 0x139   :  { %v176_v44 = vadd.f32 %v175_v41, %v132_v42 }
 0x140   :  { %v178_v43 = vpop.f32.mrf.mxu1 }
 0x141   :  { %v179_v45 = vadd.f32 %v178_v43, %v137_v40 }
 0x143   :  { %367 = vtanh.f32 %v179_v45 }
 0x144   :  { %369 = vtanh.f32 %v176_v44 }
 0x145   :  { %371 = vtanh.f32 %v173_v47 }
 0x146   :  { %373 = vtanh.f32 %v170_v49 }
 0x149   :  { %v368_v50 = vpop.eup %367 }
 0x14a   :  { %237 = vmatpush.msra.mxu2 %v368_v50  ;;  %v370_v51 = vpop.eup %369 }
 0x14b   :  { %v372_v52 = vpop.eup %371 }
 0x14c   :  { %238 = vmatpush.msra.mxu2 %v370_v51  ;;  %v374_v54 = vpop.eup %373 }
 0x14e   :  { %239 = vmatpush.msra.mxu2 %v372_v52 }
 0x150   :  { %240 = vmatpush.msra.mxu2 %v374_v54 }
 0x151   :  { %347 = vmatmul.msk.f32.vlgmr.msra.gmra.mxu2 %vm139_vm1, %v185_v53 }
 0x159   :  { %348 = vmatmul.msk.f32.gmra.mxu2 %vm139_vm1, %v186_v55 }
 0x161   :  { %349 = vmatmul.msk.f32.gmra.mxu2 %vm139_vm1, %v187_v56 }
 0x169   :  { %350 = vmatmul.msk.f32.gmra.mxu2 %vm139_vm1, %v188_v57 }
 0x1d4   :  { %v242_v59 = vpop.f32.mrf.mxu2 }
 0x1d5   :  { %v243_v60 = vadd.f32 %v242_v59, %v196_v58 }
 0x1d7   :  { %375 = vtanh.f32 %v243_v60 }
 0x1dc   :  { %v245_v2 = vpop.f32.mrf.mxu2 }
 0x1dd   :  { %v376_v3 = vpop.eup %375  ;;  %v246_v4 = vadd.f32 %v245_v2, %v201_v1 }
 0x1de   :  { %266 = vxpose.xlu0.b32.start [1/4] (short) (narrow) %v376_v3, 8 }
 0x1df   :  { %377 = vtanh.f32 %v246_v4 }
 0x1e4   :  { %v248_v6 = vpop.f32.mrf.mxu2 }
 0x1e5   :  { %v378_v7 = vpop.eup %377  ;;  %v249_v8 = vadd.f32 %v248_v6, %v206_v5 }
 0x1e6   :  { %267 = vxpose.xlu0.b32.cont [2/4] (short) (narrow) %v378_v7, 8 }
 0x1e7   :  { %379 = vtanh.f32 %v249_v8 }
 0x1ec   :  { %v251_v10 = vpop.f32.mrf.mxu2 }
 0x1ed   :  { %v380_v11 = vpop.eup %379  ;;  %v252_v12 = vadd.f32 %v251_v10, %v211_v9 }
 0x1ee   :  { %268 = vxpose.xlu0.b32.cont [3/4] (short) (narrow) %v380_v11, 8 }
 0x1ef   :  { %381 = vtanh.f32 %v252_v12 }
 0x1f5   :  { %v382_v13 = vpop.eup %381 }
 0x1f6   :  { %269 = vxpose.xlu0.b32.end [4/4] (short) (narrow) %v382_v13, 8 }
 0x282   :  { %v282_v14 = vpop.trf.xlu0 }
 0x283   :  { %351 = vmatmul.msk.f32.vlgmr.msra.gmra.mxu3 %vm139_vm1, %v282_v14 }
 0x306   :  { %v318_v16 = vpop.f32.mrf.mxu3 }
 0x307   :  { %v319_v17 = vadd.f32 %v358_v15, %v318_v16 }
 0x309   :  { %321 = vst.msk [vmem:[#allocation2] sm:$0xff] %vm62_vm0, %v319_v17 }
 0x30a   :  { %332 = dma.vmem_to_hbm [thread:$0]  %s328_s0, 128, %s330_s19, [#allocation3]  }
 0x30b   :  { %407 = dma.done.wait [#allocation3], 128  }
 0x30c   :  { %408 = vsyncadd [#allocation3], 4294967168 }
 0x30d   :  { %337 = vsyncpa [#allocation3], 1 }

</bundles_post_ra>
